<compile_context>
chip_gen: v7x
topology: tpu7x:2x2x1
jax: 0.10.0
libtpu: 0.0.40
codegen_flags: <defaults>
</compile_context>

<pallas_src>
import math

import jax
import jax.numpy as jnp
from jax.experimental import pallas as pl
from jax.experimental.pallas import tpu as pltpu

# ----- synthetic robot constants (deterministic, in-script) -----
ROBOT_L1 = 1.0
ROBOT_L2 = 0.8
ROBOT_RANGE = (-2.0, 2.0)        # input xyz range
NNET_INPUT_RANGE = (0.0, 1.0)    # net input range

# scale_values(x, robot_range, net_input_range) folded to affine x*scale + shift
IN_SCALE = (NNET_INPUT_RANGE[1] - NNET_INPUT_RANGE[0]) / (ROBOT_RANGE[1] - ROBOT_RANGE[0])
IN_SHIFT = NNET_INPUT_RANGE[0] - ROBOT_RANGE[0] * IN_SCALE

HIDDEN = 64
N_THETA = 3
OUT_W = 2 * N_THETA   # packed output rows: [thetas(3) ; pred_xyz(3)]
LANE = 128
BN_EPS = 1e-5


def _round_up(n, m):
    return ((n + m - 1) // m) * m


def invkin_kernel(xT_ref,
                  w1t_ref, w23t_ref, b123_ref, w4t_ref, b4t_ref,
                  out_ref):
    # Transposed (feature, batch) layout: activations are (HIDDEN, tb), lane-dense.
    xT = xT_ref[...]                                                    # (3, tb) f32

    # ---- layer 1: (64,3) @ (3,tb) on the MXU; BN + input affine pre-folded ----
    h = jnp.dot(w1t_ref[...], xT, preferred_element_type=jnp.float32)
    h = jnp.maximum(h + b123_ref[:, 0:1], 0.0)

    # ---- layers 2, 3: (64,64) @ (64,tb); optionally bf16 operands, f32 accumulation ----
    w2 = w23t_ref[0:HIDDEN, :]
    h = jnp.dot(w2, h.astype(w2.dtype), preferred_element_type=jnp.float32)
    h = jnp.maximum(h + b123_ref[:, 1:2], 0.0)

    w3 = w23t_ref[HIDDEN:2 * HIDDEN, :]
    h = jnp.dot(w3, h.astype(w3.dtype), preferred_element_type=jnp.float32)
    h = jnp.maximum(h + b123_ref[:, 2:3], 0.0)

    # ---- head: (3,64) @ (64,tb) -> thetas as rows ----
    theta = jnp.dot(w4t_ref[...], h, preferred_element_type=jnp.float32) + b4t_ref[...]

    # ---- forward kinematics (closed form of the DH bmm chain), (1, tb) rows ----
    #   x = cos(t0) * (L1*cos(t1) + L2*cos(t1+t2))
    #   y = sin(t0) * (L1*cos(t1) + L2*cos(t1+t2))
    #   z = L1*sin(t1) + L2*sin(t1+t2)
    th0 = theta[0:1, :]
    th1 = theta[1:2, :]
    th2 = theta[2:3, :]
    c0, s0 = jnp.cos(th0), jnp.sin(th0)
    c1, s1 = jnp.cos(th1), jnp.sin(th1)
    c12, s12 = jnp.cos(th1 + th2), jnp.sin(th1 + th2)
    radial = ROBOT_L1 * c1 + ROBOT_L2 * c12
    px = c0 * radial
    py = s0 * radial
    pz = ROBOT_L1 * s1 + ROBOT_L2 * s12

    # direct row writes: rows 0:3 = thetas, rows 3:6 = FK xyz (all lane-dense stores)
    out_ref[0:N_THETA, :] = theta.astype(out_ref.dtype)
    out_ref[N_THETA + 0:N_THETA + 1, :] = px.astype(out_ref.dtype)
    out_ref[N_THETA + 1:N_THETA + 2, :] = py.astype(out_ref.dtype)
    out_ref[N_THETA + 2:N_THETA + 3, :] = pz.astype(out_ref.dtype)


def fold_params(params, *, mxu_dtype=jnp.float32):
    """Fold input affine + eval-mode BatchNorm into the linears and transpose to
    (feature_out, feature_in) slabs for the (feature, batch) kernel layout."""
    (w1, b1, g1, t1, w2, b2, g2, t2, w3, b3, g3, t3, w4, b4) = params
    # layer 1: scaled_x @ w1 + b1 == x @ (IN_SCALE*w1) + (b1 + IN_SHIFT*colsum(w1)); then BN
    w1f = (IN_SCALE * w1) * g1
    b1f = (b1 + IN_SHIFT * jnp.sum(w1, axis=0, keepdims=True)) * g1 + t1
    # layers 2, 3: (h @ w + b)*g + t == h @ (w*g) + (b*g + t)
    w2f, b2f = w2 * g2, b2 * g2 + t2
    w3f, b3f = w3 * g3, b3 * g3 + t3

    w1t = w1f.T.astype(jnp.float32)                                     # (H, 3)
    w23t = jnp.concatenate([w2f.T, w3f.T], axis=0).astype(mxu_dtype)    # (2H, H)
    b123 = jnp.concatenate([b1f.T, b2f.T, b3f.T], axis=1)               # (H, 3)
    w4t = w4.T.astype(jnp.float32)                                      # (3, H)
    b4t = b4.T.astype(jnp.float32)                                      # (3, 1)
    return (w1t, w23t, b123, w4t, b4t)


def invkin_forward(x, folded_params, *, tb_max=4096):
    """x: (B, 3) -> (thetas (B, 3), pred_x (B, 3)). folded_params from fold_params()."""
    B = x.shape[0]

    # balanced, lane-aligned tiles; >=2 grid steps when possible (v7x megacore)
    B_pad = _round_up(max(B, LANE), LANE)
    n_tiles = pl.cdiv(B_pad, tb_max)
    if B_pad >= 2 * LANE:
        n_tiles = max(n_tiles, 2)
    tb = _round_up(pl.cdiv(B_pad, n_tiles), LANE)
    B_pad = n_tiles * tb

    xT = jnp.pad(x.astype(jnp.float32).T, ((0, 0), (0, B_pad - B)))     # (3, B_pad)

    x_spec = pl.BlockSpec((3, tb), lambda i: (0, i))
    # constant (0,0) block index => weights are not re-fetched between grid steps
    param_specs = [pl.BlockSpec(p.shape, lambda i: (0, 0)) for p in folded_params]
    out_spec = pl.BlockSpec((OUT_W, tb), lambda i: (0, i))

    weight_bytes = sum(int(p.size) * p.dtype.itemsize for p in folded_params)
    cost = pl.CostEstimate(
        flops=2 * B_pad * (3 * HIDDEN + 2 * HIDDEN * HIDDEN + HIDDEN * N_THETA),
        transcendentals=6 * B_pad,
        bytes_accessed=4 * (3 + OUT_W) * B_pad + weight_bytes,
    )

    out = pl.pallas_call(
        invkin_kernel,
        grid=(n_tiles,),
        in_specs=[x_spec] + param_specs,
        out_specs=out_spec,
        out_shape=jax.ShapeDtypeStruct((OUT_W, B_pad), jnp.float32),
        compiler_params=pltpu.CompilerParams(dimension_semantics=("parallel",)),
        cost_estimate=cost,
    )(xT, *folded_params)

    thetas = out[:N_THETA, :B].T
    pred_x = out[N_THETA:2 * N_THETA, :B].T
    return thetas, pred_x


def init_params(key, hidden=HIDDEN, n_theta=N_THETA):
    ks = jax.random.split(key, 7)

    def linear(k, fin, fout):
        kw, kb = jax.random.split(k)
        bound = 1.0 / math.sqrt(fin)
        w = jax.random.uniform(kw, (fin, fout), jnp.float32, -bound, bound)
        b = jax.random.uniform(kb, (1, fout), jnp.float32, -bound, bound)
        return w, b

    def batchnorm(k, dim):
        kg, kb = jax.random.split(k)
        gamma = 1.0 + 0.1 * jax.random.normal(kg, (1, dim), jnp.float32)
        beta = 0.1 * jax.random.normal(kb, (1, dim), jnp.float32)
        running_mean = jnp.zeros((1, dim), jnp.float32)
        running_var = jnp.ones((1, dim), jnp.float32)
        scale = gamma / jnp.sqrt(running_var + BN_EPS)
        shift = beta - running_mean * scale
        return scale, shift

    w1, b1 = linear(ks[0], 3, hidden)
    w2, b2 = linear(ks[1], hidden, hidden)
    w3, b3 = linear(ks[2], hidden, hidden)
    w4, b4 = linear(ks[3], hidden, n_theta)
    g1, t1 = batchnorm(ks[4], hidden)
    g2, t2 = batchnorm(ks[5], hidden)
    g3, t3 = batchnorm(ks[6], hidden)
    return (w1, b1, g1, t1, w2, b2, g2, t2, w3, b3, g3, t3, w4, b4)


def invkin_ref(x, params):
    """Pure-JAX reference on the ORIGINAL (unfolded) params."""
    (w1, b1, g1, t1, w2, b2, g2, t2, w3, b3, g3, t3, w4, b4) = params
    h = x * IN_SCALE + IN_SHIFT
    for w, b, g, t in ((w1, b1, g1, t1), (w2, b2, g2, t2), (w3, b3, g3, t3)):
        h = (h @ w + b) * g + t
        h = jnp.maximum(h, 0.0)
    thetas = h @ w4 + b4
    th0, th1, th2 = thetas[:, 0], thetas[:, 1], thetas[:, 2]
    radial = ROBOT_L1 * jnp.cos(th1) + ROBOT_L2 * jnp.cos(th1 + th2)
    pred = jnp.stack([jnp.cos(th0) * radial,
                      jnp.sin(th0) * radial,
                      ROBOT_L1 * jnp.sin(th1) + ROBOT_L2 * jnp.sin(th1 + th2)], axis=-1)
    return thetas, pred


if __name__ == "__main__":
    key = jax.random.PRNGKey(0)
    kx, kp = jax.random.split(key)

    B = 16
    x = jax.random.uniform(kx, (B, 3), jnp.float32,
                           minval=ROBOT_RANGE[0], maxval=ROBOT_RANGE[1])
    params = init_params(kp)
    thetas_ref, pred_ref = invkin_ref(x, params)

    # exact path: f32 MXU operands, matches the f32 PyTorch semantics to 1e-4
    folded_f32 = fold_params(params, mxu_dtype=jnp.float32)
    thetas, pred_x = invkin_forward(x, folded_f32)
    jax.block_until_ready((thetas, pred_x))
    assert thetas.shape == (B, N_THETA) and pred_x.shape == (B, 3)
    assert jnp.allclose(thetas, thetas_ref, atol=1e-4, rtol=1e-4)
    assert jnp.allclose(pred_x, pred_ref, atol=1e-4, rtol=1e-4)

    # fast path: bf16 operands for the two 64x64 hidden matmuls (f32 accumulation)
    folded_bf16 = fold_params(params, mxu_dtype=jnp.bfloat16)
    thetas_b, pred_b = invkin_forward(x, folded_bf16)
    jax.block_until_ready((thetas_b, pred_b))
    assert jnp.allclose(thetas_b, thetas_ref, atol=1e-1, rtol=1e-1)
    assert jnp.allclose(pred_b, pred_ref, atol=1e-1, rtol=1e-1)

    print("KERNEL_OK")
</pallas_src>

<mosaic_0001>
module attributes {stable_mosaic.version = 11 : i64} {
  func.func @invkin_kernel(%arg0: i32, %arg1: memref<3x128xf32, #tpu.memory_space<vmem>>, %arg2: memref<64x3xf32, #tpu.memory_space<vmem>>, %arg3: memref<128x64xf32, #tpu.memory_space<vmem>>, %arg4: memref<64x3xf32, #tpu.memory_space<vmem>>, %arg5: memref<3x64xf32, #tpu.memory_space<vmem>>, %arg6: memref<3x1xf32, #tpu.memory_space<vmem>>, %arg7: memref<6x128xf32, #tpu.memory_space<vmem>>) attributes {dimension_semantics = [#tpu.dimension_semantics<parallel>], iteration_bounds = array<i64: 1>, scalar_prefetch = 0 : i64, scratch_operands = 0 : i64, tpu.core_type = #tpu.core_type<tc>, window_params = [{transform_indices = @transform_0, window_bounds = array<i64: 3, 128>}, {pipeline_mode = #tpu.pipeline_mode<synchronous>, transform_indices = @transform_1, window_bounds = array<i64: 64, 3>}, {pipeline_mode = #tpu.pipeline_mode<synchronous>, transform_indices = @transform_2, window_bounds = array<i64: 128, 64>}, {pipeline_mode = #tpu.pipeline_mode<synchronous>, transform_indices = @transform_3, window_bounds = array<i64: 64, 3>}, {pipeline_mode = #tpu.pipeline_mode<synchronous>, transform_indices = @transform_4, window_bounds = array<i64: 3, 64>}, {pipeline_mode = #tpu.pipeline_mode<synchronous>, transform_indices = @transform_5, window_bounds = array<i64: 3, 1>}, {transform_indices = @transform_6, window_bounds = array<i64: 6, 128>}]} {
    %c0 = arith.constant 0 : index
    %c0_0 = arith.constant 0 : index
    %0 = vector.load %arg1[%c0, %c0_0] : memref<3x128xf32, #tpu.memory_space<vmem>>, vector<3x128xf32>
    %c0_1 = arith.constant 0 : index
    %c0_2 = arith.constant 0 : index
    %1 = vector.load %arg2[%c0_1, %c0_2] : memref<64x3xf32, #tpu.memory_space<vmem>>, vector<64x3xf32>
    %cst = arith.constant dense<0.000000e+00> : vector<64x128xf32>
    %2 = tpu.matmul %1, %0, %cst {dimension_numbers = #tpu.dot_dimension_numbers<[1], [0], [0], [1], [0, 0, 1, 1], [], []>} : vector<64x3xf32>, vector<3x128xf32>, vector<64x128xf32> -> vector<64x128xf32>
    %c0_3 = arith.constant 0 : index
    %c0_4 = arith.constant 0 : index
    %3 = vector.load %arg4[%c0_3, %c0_4] : memref<64x3xf32, #tpu.memory_space<vmem>>, vector<64x1xf32>
    %4 = vector.broadcast %3 : vector<64x1xf32> to vector<64x128xf32>
    %5 = arith.addf %2, %4 : vector<64x128xf32>
    %cst_5 = arith.constant 0.000000e+00 : f32
    %6 = vector.broadcast %cst_5 : f32 to vector<64x128xf32>
    %7 = arith.maximumf %5, %6 : vector<64x128xf32>
    %c0_6 = arith.constant 0 : index
    %c0_7 = arith.constant 0 : index
    %8 = vector.load %arg3[%c0_6, %c0_7] : memref<128x64xf32, #tpu.memory_space<vmem>>, vector<64x64xf32>
    %cst_8 = arith.constant dense<0.000000e+00> : vector<64x128xf32>
    %9 = tpu.matmul %8, %7, %cst_8 {dimension_numbers = #tpu.dot_dimension_numbers<[1], [0], [0], [1], [0, 0, 1, 1], [], []>} : vector<64x64xf32>, vector<64x128xf32>, vector<64x128xf32> -> vector<64x128xf32>
    %c0_9 = arith.constant 0 : index
    %c1 = arith.constant 1 : index
    %10 = vector.load %arg4[%c0_9, %c1] : memref<64x3xf32, #tpu.memory_space<vmem>>, vector<64x1xf32>
    %11 = vector.broadcast %10 : vector<64x1xf32> to vector<64x128xf32>
    %12 = arith.addf %9, %11 : vector<64x128xf32>
    %cst_10 = arith.constant 0.000000e+00 : f32
    %13 = vector.broadcast %cst_10 : f32 to vector<64x128xf32>
    %14 = arith.maximumf %12, %13 : vector<64x128xf32>
    %c64 = arith.constant 64 : index
    %c0_11 = arith.constant 0 : index
    %15 = vector.load %arg3[%c64, %c0_11] : memref<128x64xf32, #tpu.memory_space<vmem>>, vector<64x64xf32>
    %cst_12 = arith.constant dense<0.000000e+00> : vector<64x128xf32>
    %16 = tpu.matmul %15, %14, %cst_12 {dimension_numbers = #tpu.dot_dimension_numbers<[1], [0], [0], [1], [0, 0, 1, 1], [], []>} : vector<64x64xf32>, vector<64x128xf32>, vector<64x128xf32> -> vector<64x128xf32>
    %c0_13 = arith.constant 0 : index
    %c2 = arith.constant 2 : index
    %17 = vector.load %arg4[%c0_13, %c2] : memref<64x3xf32, #tpu.memory_space<vmem>>, vector<64x1xf32>
    %18 = vector.broadcast %17 : vector<64x1xf32> to vector<64x128xf32>
    %19 = arith.addf %16, %18 : vector<64x128xf32>
    %cst_14 = arith.constant 0.000000e+00 : f32
    %20 = vector.broadcast %cst_14 : f32 to vector<64x128xf32>
    %21 = arith.maximumf %19, %20 : vector<64x128xf32>
    %c0_15 = arith.constant 0 : index
    %c0_16 = arith.constant 0 : index
    %22 = vector.load %arg5[%c0_15, %c0_16] : memref<3x64xf32, #tpu.memory_space<vmem>>, vector<3x64xf32>
    %cst_17 = arith.constant dense<0.000000e+00> : vector<3x128xf32>
    %23 = tpu.matmul %22, %21, %cst_17 {dimension_numbers = #tpu.dot_dimension_numbers<[1], [0], [0], [1], [0, 0, 1, 1], [], []>} : vector<3x64xf32>, vector<64x128xf32>, vector<3x128xf32> -> vector<3x128xf32>
    %c0_18 = arith.constant 0 : index
    %c0_19 = arith.constant 0 : index
    %24 = vector.load %arg6[%c0_18, %c0_19] : memref<3x1xf32, #tpu.memory_space<vmem>>, vector<3x1xf32>
    %25 = vector.broadcast %24 : vector<3x1xf32> to vector<3x128xf32>
    %26 = arith.addf %23, %25 : vector<3x128xf32>
    %27 = vector.extract_strided_slice %26 {offsets = [0, 0], sizes = [1, 128], strides = [1, 1]} : vector<3x128xf32> to vector<1x128xf32>
    %28 = vector.extract_strided_slice %26 {offsets = [1, 0], sizes = [1, 128], strides = [1, 1]} : vector<3x128xf32> to vector<1x128xf32>
    %29 = vector.extract_strided_slice %26 {offsets = [2, 0], sizes = [1, 128], strides = [1, 1]} : vector<3x128xf32> to vector<1x128xf32>
    %30 = math.cos %27 : vector<1x128xf32>
    %31 = math.sin %27 : vector<1x128xf32>
    %32 = math.cos %28 : vector<1x128xf32>
    %33 = math.sin %28 : vector<1x128xf32>
    %34 = arith.addf %28, %29 : vector<1x128xf32>
    %35 = math.cos %34 : vector<1x128xf32>
    %36 = arith.addf %28, %29 : vector<1x128xf32>
    %37 = math.sin %36 : vector<1x128xf32>
    %cst_20 = arith.constant 1.000000e+00 : f32
    %38 = vector.broadcast %cst_20 : f32 to vector<1x128xf32>
    %39 = arith.mulf %38, %32 : vector<1x128xf32>
    %cst_21 = arith.constant 8.000000e-01 : f32
    %40 = vector.broadcast %cst_21 : f32 to vector<1x128xf32>
    %41 = arith.mulf %40, %35 : vector<1x128xf32>
    %42 = arith.addf %39, %41 : vector<1x128xf32>
    %43 = arith.mulf %30, %42 : vector<1x128xf32>
    %44 = arith.mulf %31, %42 : vector<1x128xf32>
    %cst_22 = arith.constant 1.000000e+00 : f32
    %45 = vector.broadcast %cst_22 : f32 to vector<1x128xf32>
    %46 = arith.mulf %45, %33 : vector<1x128xf32>
    %cst_23 = arith.constant 8.000000e-01 : f32
    %47 = vector.broadcast %cst_23 : f32 to vector<1x128xf32>
    %48 = arith.mulf %47, %37 : vector<1x128xf32>
    %49 = arith.addf %46, %48 : vector<1x128xf32>
    %c0_24 = arith.constant 0 : index
    %c0_25 = arith.constant 0 : index
    %50 = vector.load %arg7[%c0_24, %c0_25] : memref<6x128xf32, #tpu.memory_space<vmem>>, vector<3x128xf32>
    tpu.vector_store %arg7[%c0_24, %c0_25], %26 {strides = array<i32>} : memref<6x128xf32, #tpu.memory_space<vmem>>, vector<3x128xf32>,
    %c3 = arith.constant 3 : index
    %c0_26 = arith.constant 0 : index
    %51 = vector.load %arg7[%c3, %c0_26] : memref<6x128xf32, #tpu.memory_space<vmem>>, vector<1x128xf32>
    tpu.vector_store %arg7[%c3, %c0_26], %43 {strides = array<i32>} : memref<6x128xf32, #tpu.memory_space<vmem>>, vector<1x128xf32>,
    %c4 = arith.constant 4 : index
    %c0_27 = arith.constant 0 : index
    %52 = vector.load %arg7[%c4, %c0_27] : memref<6x128xf32, #tpu.memory_space<vmem>>, vector<1x128xf32>
    tpu.vector_store %arg7[%c4, %c0_27], %44 {strides = array<i32>} : memref<6x128xf32, #tpu.memory_space<vmem>>, vector<1x128xf32>,
    %c5 = arith.constant 5 : index
    %c0_28 = arith.constant 0 : index
    %53 = vector.load %arg7[%c5, %c0_28] : memref<6x128xf32, #tpu.memory_space<vmem>>, vector<1x128xf32>
    tpu.vector_store %arg7[%c5, %c0_28], %49 {strides = array<i32>} : memref<6x128xf32, #tpu.memory_space<vmem>>, vector<1x128xf32>,
    return
  }
  func.func @transform_0(%arg0: i32) -> (i32, i32) {
    %c0_i32 = arith.constant 0 : i32
    %c0_i32_0 = arith.constant 0 : i32
    return %c0_i32, %arg0 : i32, i32
  }
  func.func @transform_1(%arg0: i32) -> (i32, i32) {
    %c0_i32 = arith.constant 0 : i32
    %c0_i32_0 = arith.constant 0 : i32
    %c0_i32_1 = arith.constant 0 : i32
    return %c0_i32, %c0_i32_0 : i32, i32
  }
  func.func @transform_2(%arg0: i32) -> (i32, i32) {
    %c0_i32 = arith.constant 0 : i32
    %c0_i32_0 = arith.constant 0 : i32
    %c0_i32_1 = arith.constant 0 : i32
    return %c0_i32, %c0_i32_0 : i32, i32
  }
  func.func @transform_3(%arg0: i32) -> (i32, i32) {
    %c0_i32 = arith.constant 0 : i32
    %c0_i32_0 = arith.constant 0 : i32
    %c0_i32_1 = arith.constant 0 : i32
    return %c0_i32, %c0_i32_0 : i32, i32
  }
  func.func @transform_4(%arg0: i32) -> (i32, i32) {
    %c0_i32 = arith.constant 0 : i32
    %c0_i32_0 = arith.constant 0 : i32
    %c0_i32_1 = arith.constant 0 : i32
    return %c0_i32, %c0_i32_0 : i32, i32
  }
  func.func @transform_5(%arg0: i32) -> (i32, i32) {
    %c0_i32 = arith.constant 0 : i32
    %c0_i32_0 = arith.constant 0 : i32
    %c0_i32_1 = arith.constant 0 : i32
    return %c0_i32, %c0_i32_0 : i32, i32
  }
  func.func @transform_6(%arg0: i32) -> (i32, i32) {
    %c0_i32 = arith.constant 0 : i32
    %c0_i32_0 = arith.constant 0 : i32
    return %c0_i32, %arg0 : i32, i32
  }
}

</mosaic_0001>

<bundles_post_ra>
// kernel: tpu_custom_call.1
= control target key start
LH: loop header
LB: loop body
LE: loop exit
PB: predicated region body
PF: predicated region fallthrough
CT: control target
= control target key end

     0   :  { %vm106_vm0 = vcmask 1042432   ;;  %vm81_vm1 = vcmask 23552   ;;  %v1388_v4 = vmov 0   ;;  %s1696_s0 = inlined_call_operand.vmem [shape: f32[3,128], index: 0, kind: input, shape index: {}]   ;;  %s1697_s1 = inlined_call_operand.vmem [shape: f32[64,3], index: 1, kind: input, shape index: {}]   ;;  %s1698_s2 = inlined_call_operand.vmem [shape: f32[128,64], index: 2, kind: input, shape index: {}]   ;;  %s1699_s3 = inlined_call_operand.vmem [shape: f32[64,3], index: 3, kind: input, shape index: {}]   ;;  %s1700_s4 = inlined_call_operand.vmem [shape: f32[3,64], index: 4, kind: input, shape index: {}]   ;;  %s1701_s5 = inlined_call_operand.vmem [shape: f32[3,1], index: 5, kind: input, shape index: {}]   ;;  %s1702_s6 = inlined_call_operand.hbm [shape: f32[6,128], index: 6, kind: output, shape index: {}]  }
   0x1   :  { %v24_v0 = vld [vmem:[%s1696_s0] sm:$0x7]  ;;  %v26_v2 = vld [vmem:[%s1697_s1 + $0x8] sm:$0xff]  ;;  %v27_v3 = vld [vmem:[%s1697_s1 + $0x10] sm:$0xff]  ;;  %1349 = vset.pattern.permute.xlu0 %v1388_v4  ;;  %1350 = vset.pattern.permute.xlu1 %v1388_v4 }
   0x2   :  { %v25_v1 = vld [vmem:[%s1697_s1] sm:$0xff]  ;;  %1195 = vmatprep.subr.msk.mxu0 %vm106_vm0, %v24_v0  ;;  %v1460_v6 = vld [vmem:[%s1699_s3 + $0x10] sm:$0xff]  ;;  %v28_v7 = vld [vmem:[%s1697_s1 + $0x18] sm:$0xff] }
   0x3   :  { %1197 = vmatprep.mubr.msk.f32.mxu0 %vm81_vm1, %v25_v1  ;;  %1196 = vmatpush3.msk.msra.mxu0 %vm106_vm0, %v24_v0  ;;  %v1454_v5 = vld [vmem:[%s1699_s3] sm:$0xff]  ;;  %v1474_v9 = vld [vmem:[%s1699_s3 + $0x8] sm:$0xff] }
   0x4   :  { %1198 = vmatmul.mubr.msk.f32.vlgmr.msra.gmra.mrb[0].mxu0 %vm81_vm1, %v26_v2  ;;  %43 = vperm.xlu0 %1349, %v1454_v5   ;;  %v29_v8 = vld [vmem:[%s1697_s1 + $0x20] sm:$0xff] }
   0x5   :  { %1200 = vmatprep.mubr.msk.f32.mxu0 %vm81_vm1, %v27_v3  ;;  %53 = vperm.xlu1 %1350, %v1460_v6  }
   0x6   :  { %11 = vsyncpa [#allocation3], 0  ;;  %v1479_v10 = vld [vmem:[%s1699_s3 + $0x18] sm:$0xff]  ;;  %v30_v11 = vld [vmem:[%s1697_s1 + $0x28] sm:$0xff]  ;;  %vm263_vm2 = vcmask 523264   ;;  %v1389_v19 = vmov 1  }
   0x7   :  { %v31_v12 = vld [vmem:[%s1697_s1 + $0x30] sm:$0xff]  ;;  %v1494_v13 = vld [vmem:[%s1699_s3 + $0x20] sm:$0xff]  ;;  %v1499_v14 = vld [vmem:[%s1699_s3 + $0x28] sm:$0xff]  ;;  %v1390_v0 = vmov 2   ;;  %vm1392_vm3 = vmmov 0  }
   0x8   :  { %1201 = vmatmul.mubr.msk.f32.gmra.mrb[2].mxu0 %vm81_vm1, %v28_v7  ;;  %48 = vperm.xlu0 %1349, %v1474_v9   ;;  %v32_v15 = vld [vmem:[%s1697_s1 + $0x38] sm:$0xff]  ;;  %v1511_v16 = vld [vmem:[%s1699_s3 + $0x30] sm:$0xff]  ;;  %v223_v18 = vld [vmem:[%s1698_s2] sm:$0xff] }
   0x9   :  { %1203 = vmatprep.mubr.msk.f32.mxu0 %vm81_vm1, %v29_v8  ;;  %58 = vperm.xlu1 %1350, %v1479_v10   ;;  %v1516_v17 = vld [vmem:[%s1699_s3 + $0x38] sm:$0xff]  ;;  %v224_v56 = vld [vmem:[%s1698_s2 + $0x8] sm:$0xff]  ;;  %v225_v57 = vld [vmem:[%s1698_s2 + $0x10] sm:$0xff] }
   0xa   :  { %1225 = vmatprep.mubr.msk.f32.mxu1 %vm263_vm2, %v223_v18  ;;  %v226_v58 = vld [vmem:[%s1698_s2 + $0x18] sm:$0xff]  ;;  %v227_v59 = vld [vmem:[%s1698_s2 + $0x20] sm:$0xff]  ;;  %v228_v60 = vld [vmem:[%s1698_s2 + $0x28] sm:$0xff] }
   0xb   :  { %v229_v61 = vld [vmem:[%s1698_s2 + $0x30] sm:$0xff]  ;;  %v230_v62 = vld [vmem:[%s1698_s2 + $0x38] sm:$0xff]  ;;  %v401_v63 = vld [vmem:[%s1698_s2 + $0x40] sm:$0xff] }
   0xc   :  { %1204 = vmatmul.mubr.msk.f32.gmra.mrb[4].mxu0 %vm81_vm1, %v30_v11  ;;  %63 = vperm.xlu0 %1349, %v1494_v13  }
   0xd   :  { %1206 = vmatprep.mubr.msk.f32.mxu0 %vm81_vm1, %v31_v12  ;;  %68 = vperm.xlu1 %1350, %v1499_v14  }
  0x10   :  { %1207 = vmatmul.mubr.msk.f32.gmra.mrb[6].mxu0 %vm81_vm1, %v32_v15  ;;  %73 = vperm.xlu0 %1349, %v1511_v16  }
  0x11   :  { %78 = vperm.xlu1 %1350, %v1516_v17   ;;  %1253 = vmatprep.mubr.msk.f32.mxu0 %vm263_vm2, %v401_v63 }
  0x14   :  { %1351 = vset.pattern.permute.xlu0 %v1389_v19 }
  0x15   :  { %1352 = vset.pattern.permute.xlu1 %v1389_v19  ;;  %232 = vperm.xlu0 %1351, %v1454_v5  }
  0x16   :  { %236 = vperm.xlu1 %1352, %v1474_v9  }
  0x19   :  { %244 = vperm.xlu0 %1351, %v1479_v10  }
  0x1a   :  { %240 = vperm.xlu1 %1352, %v1460_v6  }
  0x1d   :  { %252 = vperm.xlu0 %1351, %v1499_v14  }
  0x1e   :  { %248 = vperm.xlu1 %1352, %v1494_v13  }
  0x21   :  { %260 = vperm.xlu0 %1351, %v1516_v17  }
  0x22   :  { %256 = vperm.xlu1 %1352, %v1511_v16  }
  0x25   :  { %1354 = vset.pattern.permute.xlu0 %v1390_v0 }
  0x26   :  { %1353 = vset.pattern.permute.xlu1 %v1390_v0  ;;  %414 = vperm.xlu0 %1354, %v1474_v9  }
  0x27   :  { %410 = vperm.xlu1 %1353, %v1454_v5  }
  0x2a   :  { %426 = vperm.xlu0 %1354, %v1494_v13  }
  0x2b   :  { %418 = vperm.xlu1 %1353, %v1460_v6  }
  0x2e   :  { %434 = vperm.xlu0 %1354, %v1511_v16  }
  0x2f   :  { %422 = vperm.xlu1 %1353, %v1479_v10  }
  0x32   :  { %1355 = vset.pattern.permute.xlu0 %v1388_v4 }
  0x33   :  { %430 = vperm.xlu1 %1353, %v1499_v14  }
  0x37   :  { %438 = vperm.xlu1 %1353, %v1516_v17  }
  0x83   :  { %v44_v20 = vpop.permute.xlu0 %43 }
  0x84   :  { %v54_v21 = vpop.permute.xlu1 %53 }
  0x87   :  { %v49_v22 = vpop.permute.xlu0 %48 }
  0x88   :  { %v59_v23 = vpop.permute.xlu1 %58 }
  0x8b   :  { %v64_v36 = vpop.permute.xlu0 %63 }
  0x8c   :  { %v69_v33 = vpop.permute.xlu1 %68 }
  0x8f   :  { %v74_v48 = vpop.permute.xlu0 %73 }
  0x90   :  { %v79_v45 = vpop.permute.xlu1 %78 }
  0x94   :  { %v233_v1 = vpop.permute.xlu0 %232 }
  0x95   :  { %v237_v2 = vpop.permute.xlu1 %236 }
  0x98   :  { %v245_v3 = vpop.permute.xlu0 %244 }
  0x99   :  { %v241_v7 = vpop.permute.xlu1 %240 }
  0x9c   :  { %v253_v16 = vpop.permute.xlu0 %252 }
  0x9d   :  { %v249_v19 = vpop.permute.xlu1 %248 }
  0xd7   :  { %v1199_v24 = vpop.f32.mrb[0].mxu0 }
  0xd8   :  { %v182_v25 = vadd.f32 %v1199_v24, %v49_v22  ;;  %v176_v26 = vpop.f32.mrb[1].mxu0 }
  0xd9   :  { %v177_v27 = vadd.f32 %v176_v26, %v44_v20  ;;  %v261_v26 = vpop.permute.xlu0 %260 }
  0xda   :  { %v216_v28 = vmax.f32 %v182_v25, 0.0 }
  0xdb   :  { %v215_v29 = vmax.f32 %v177_v27, 0.0  ;;  %v1202_v30 = vpop.f32.mrb[2].mxu0 }
  0xdc   :  { %v192_v31 = vadd.f32 %v1202_v30, %v59_v23  ;;  %v186_v32 = vpop.f32.mrb[3].mxu0 }
  0xdd   :  { %v187_v34 = vadd.f32 %v186_v32, %v54_v21  ;;  %v1284_v35 = vpack.c.bf16 %v216_v28, %v215_v29  ;;  %v257_v29 = vpop.permute.xlu1 %256 }
  0xde   :  { %v218_v37 = vmax.f32 %v192_v31, 0.0 }
  0xdf   :  { %v217_v38 = vmax.f32 %v187_v34, 0.0  ;;  %v1205_v39 = vpop.f32.mrb[4].mxu0  ;;  %1285 = vmatprep.subr.bf16.mxu1 %v1284_v35 }
  0xe0   :  { %v202_v40 = vadd.f32 %v1205_v39, %v69_v33  ;;  %v196_v41 = vpop.f32.mrb[5].mxu0  ;;  %1287 = vmatpush3.bf16.msra.mxu1 %v1284_v35  ;;  %v404_v39 = vld [vmem:[%s1698_s2 + $0x58] sm:$0xff] }
  0xe1   :  { %v1288_v42 = vpack.c.bf16 %v218_v37, %v217_v38  ;;  %v197_v43 = vadd.f32 %v196_v41, %v64_v36  ;;  %v402_v37 = vld [vmem:[%s1698_s2 + $0x48] sm:$0xff]  ;;  %v403_v38 = vld [vmem:[%s1698_s2 + $0x50] sm:$0xff] }
  0xe2   :  { %v220_v44 = vmax.f32 %v202_v40, 0.0  ;;  %v405_v40 = vld [vmem:[%s1698_s2 + $0x60] sm:$0xff]  ;;  %v406_v41 = vld [vmem:[%s1698_s2 + $0x68] sm:$0xff] }
  0xe3   :  { %v219_v46 = vmax.f32 %v197_v43, 0.0  ;;  %v1208_v47 = vpop.f32.mrb[6].mxu0  ;;  %1289 = vmatprep.subr.bf16.mxu1 %v1288_v42  ;;  %v408_v43 = vld [vmem:[%s1698_s2 + $0x78] sm:$0xff] }
  0xe4   :  { %v212_v49 = vadd.f32 %v1208_v47, %v79_v45  ;;  %v206_v50 = vpop.f32.mrb[7].mxu0  ;;  %1291 = vmatpush3.bf16.msra.mxu1 %v1288_v42  ;;  %v407_v42 = vld [vmem:[%s1698_s2 + $0x70] sm:$0xff]  ;;  %v1393_v45 = vmov 0.0   ;;  %v411_v47 = vpop.permute.xlu1 %410 }
  0xe5   :  { %v1292_v51 = vpack.c.bf16 %v220_v44, %v219_v46  ;;  %v207_v52 = vadd.f32 %v206_v50, %v74_v48  ;;  %v1391_v44 = vmov 0.0|0.0   ;;  %v579_v46 = vld [vmem:[%s1701_s5] sm:$0x7] }
  0xe6   :  { %v222_v53 = vmax.f32 %v212_v49, 0.0  ;;  %582 = vperm.xlu0 %1355, %v579_v46   ;;  %v415_v49 = vpop.permute.xlu0 %414  ;;  %v1395_v46 = vmov 2475754826  }
  0xe7   :  { %v221_v54 = vmax.f32 %v207_v52, 0.0  ;;  %1293 = vmatprep.subr.bf16.mxu1 %v1292_v51 }
  0xe8   :  { %1295 = vmatpush3.bf16.msra.mxu1 %v1292_v51  ;;  %v419_v48 = vpop.permute.xlu1 %418 }
  0xe9   :  { %v1296_v55 = vpack.c.bf16 %v222_v53, %v221_v54 }
  0xea   :  { %v427_v63 = vpop.permute.xlu0 %426 }
  0xeb   :  { %1297 = vmatprep.subr.bf16.mxu1 %v1296_v55 }
  0xec   :  { %1299 = vmatpush3.bf16.msra.mxu1 %v1296_v55  ;;  %v423_v50 = vpop.permute.xlu1 %422 }
  0xed   :  { %1316 = vmatprep.subr.bf16.mxu1 %v1391_v44 }
  0xef   :  { %1226 = vmatmul.mubr.msk.f32.vlgmr.msra.gmra.mrb[0].mxu1 %vm263_vm2, %v224_v56 }
  0xf0   :  { %1228 = vmatprep.mubr.msk.f32.mxu1 %vm263_vm2, %v225_v57 }
  0xf3   :  { %1229 = vmatmul.mubr.msk.f32.gmra.mrb[2].mxu1 %vm263_vm2, %v226_v58 }
  0xf4   :  { %1231 = vmatprep.mubr.msk.f32.mxu1 %vm263_vm2, %v227_v59 }
  0xf7   :  { %1232 = vmatmul.mubr.msk.f32.gmra.mrb[4].mxu1 %vm263_vm2, %v228_v60  ;;  %v431_v60 = vpop.permute.xlu1 %430 }
  0xf8   :  { %1234 = vmatprep.mubr.msk.f32.mxu1 %vm263_vm2, %v229_v61 }
  0xfb   :  { %1235 = vmatmul.mubr.msk.f32.gmra.mrb[6].mxu1 %vm263_vm2, %v230_v62 }
  0xfc   :  { %1281 = vmatprep.mubr.msk.f32.mxu1 %vm1392_vm3, %v1393_v45 }
 0x1c2   :  { %v1227_v5 = vpop.f32.mrb[0].mxu1 }
 0x1c3   :  { %v360_v8 = vadd.f32 %v1227_v5, %v237_v2  ;;  %v354_v9 = vpop.f32.mrb[1].mxu1 }
 0x1c4   :  { %v355_v6 = vadd.f32 %v354_v9, %v233_v1 }
 0x1c5   :  { %v394_v11 = vmax.f32 %v360_v8, 0.0 }
 0x1c6   :  { %v393_v12 = vmax.f32 %v355_v6, 0.0  ;;  %v1230_v13 = vpop.f32.mrb[2].mxu1  ;;  %v439_v6 = vpop.permute.xlu1 %438 }
 0x1c7   :  { %v370_v10 = vadd.f32 %v1230_v13, %v245_v3  ;;  %v364_v15 = vpop.f32.mrb[3].mxu1  ;;  %v435_v13 = vpop.permute.xlu0 %434 }
 0x1c8   :  { %v1300_v18 = vpack.c.bf16 %v394_v11, %v393_v12  ;;  %v365_v14 = vadd.f32 %v364_v15, %v241_v7 }
 0x1c9   :  { %v396_v4 = vmax.f32 %v370_v10, 0.0 }
 0x1ca   :  { %v395_v20 = vmax.f32 %v365_v14, 0.0  ;;  %v1233_v17 = vpop.f32.mrb[4].mxu1  ;;  %1301 = vmatprep.subr.bf16.mxu0 %v1300_v18 }
 0x1cb   :  { %v380_v21 = vadd.f32 %v1233_v17, %v253_v16  ;;  %v374_v22 = vpop.f32.mrb[5].mxu1  ;;  %1303 = vmatpush3.bf16.msra.mxu0 %v1300_v18  ;;  %v583_v17 = vpop.permute.xlu0 %582 }
 0x1cc   :  { %v1304_v23 = vpack.c.bf16 %v396_v4, %v395_v20  ;;  %v375_v24 = vadd.f32 %v374_v22, %v249_v19  ;;  %v578_v20 = vld [vmem:[%s1700_s4] sm:$0x7]  ;;  %s1400_s4 = smov [#allocation2]  }
 0x1cd   :  { %v398_v25 = vmax.f32 %v380_v21, 0.0  ;;  %s1095_s10 = sshll.u32 %s1400_s4, 4  ;;  %s1096_s10 = int_to_ptr.vmem [resolvable:$true] %s1095_s10 }
 0x1ce   :  { %v397_v27 = vmax.f32 %v375_v24, 0.0  ;;  %v1236_v28 = vpop.f32.mrb[6].mxu1  ;;  %1305 = vmatprep.subr.bf16.mxu0 %v1304_v23  ;;  %s1364_s11 = scalar_lea.vmem %s1096_s10, 128  ;;  %p1369_p1 = scmp.lt.s32.totalorder %s1096_s10, %s1096_s10 }
 0x1cf   :  { %v390_v30 = vadd.f32 %v1236_v28, %v261_v26  ;;  %v384_v31 = vpop.f32.mrb[7].mxu1  ;;  %1307 = vmatpush3.bf16.msra.mxu0 %v1304_v23  ;;  %p1365_p0 = scmp.ne.s32.totalorder %s1096_s10, %s1364_s11  ;;  %p1370_p2 = scmp.lt.s32.totalorder %s1364_s11, %s1364_s11 }
 0x1d0   :  { %v1308_v32 = vpack.c.bf16 %v398_v25, %v397_v27  ;;  %v385_v33 = vadd.f32 %v384_v31, %v257_v29 }
 0x1d1   :  { %v400_v34 = vmax.f32 %v390_v30, 0.0  ;;  %p1371_p3 = por %p1370_p2, %p1369_p1 }
 0x1d2   :  { %v399_v35 = vmax.f32 %v385_v33, 0.0  ;;  %1309 = vmatprep.subr.bf16.mxu0 %v1308_v32 }
 0x1d3   :  { %1311 = vmatpush3.bf16.msra.mxu0 %v1308_v32  ;;  %p1372_p4 = pnand %p1371_p3, %p1365_p0 }
 0x1d4   :  { %v1312_v36 = vpack.c.bf16 %v400_v34, %v399_v35 }
 0x1d6   :  { %1313 = vmatprep.subr.bf16.mxu0 %v1312_v36 }
 0x1d7   :  { %1315 = vmatpush3.bf16.msra.mxu0 %v1312_v36 }
 0x1da   :  { %1254 = vmatmul.mubr.msk.f32.vlgmr.msra.gmra.mrb[8].mxu0 %vm263_vm2, %v402_v37 }
 0x1db   :  { %1256 = vmatprep.mubr.msk.f32.mxu0 %vm263_vm2, %v403_v38 }
 0x1de   :  { %1257 = vmatmul.mubr.msk.f32.gmra.mrb[10].mxu0 %vm263_vm2, %v404_v39 }
 0x1df   :  { %1259 = vmatprep.mubr.msk.f32.mxu0 %vm263_vm2, %v405_v40 }
 0x1e2   :  { %1260 = vmatmul.mubr.msk.f32.gmra.mrb[12].mxu0 %vm263_vm2, %v406_v41 }
 0x1e3   :  { %1262 = vmatprep.mubr.msk.f32.mxu0 %vm263_vm2, %v407_v42  ;;  %v1394_v42 = vmov 683565275  }
 0x1e6   :  { %1263 = vmatmul.mubr.msk.f32.gmra.mrb[14].mxu0 %vm263_vm2, %v408_v43 }
 0x2ad   :  { %v1255_v51 = vpop.f32.mrb[8].mxu0 }
 0x2ae   :  { %v537_v52 = vadd.f32 %v1255_v51, %v415_v49  ;;  %v531_v53 = vpop.f32.mrb[9].mxu0 }
 0x2af   :  { %v532_v54 = vadd.f32 %v531_v53, %v411_v47 }
 0x2b0   :  { %v571_v55 = vmax.f32 %v537_v52, 0.0  ;;  %v1398_v52 = vmov 920167782  }
 0x2b1   :  { %v570_v56 = vmax.f32 %v532_v54, 0.0  ;;  %v1258_v57 = vpop.f32.mrb[10].mxu0 }
 0x2b2   :  { %v547_v58 = vadd.f32 %v1258_v57, %v423_v50  ;;  %v541_v59 = vpop.f32.mrb[11].mxu0  ;;  %v1397_v50 = vmov 2102212464  }
 0x2b3   :  { %v1317_v61 = vpack.c.bf16 %v571_v55, %v570_v56  ;;  %v542_v62 = vadd.f32 %v541_v59, %v419_v48  ;;  %v1396_v48 = vmov 2131351028   ;;  %v1399_v59 = vmov 1326507024  }
 0x2b4   :  { %v573_v0 = vmax.f32 %v547_v58, 0.0 }
 0x2b5   :  { %v572_v1 = vmax.f32 %v542_v62, 0.0  ;;  %v1261_v2 = vpop.f32.mrb[12].mxu0  ;;  %1318 = vmatpush3.bf16.msra.mxu1 %v1317_v61 }
 0x2b6   :  { %v557_v3 = vadd.f32 %v1261_v2, %v431_v60  ;;  %v551_v5 = vpop.f32.mrb[13].mxu0  ;;  %1319 = vmatprep.subr.bf16.mxu1 %v1391_v44 }
 0x2b7   :  { %v1320_v7 = vpack.c.bf16 %v573_v0, %v572_v1  ;;  %v552_v8 = vadd.f32 %v551_v5, %v427_v63 }
 0x2b8   :  { %v575_v9 = vmax.f32 %v557_v3, 0.0 }
 0x2b9   :  { %v574_v11 = vmax.f32 %v552_v8, 0.0  ;;  %v1264_v12 = vpop.f32.mrb[14].mxu0  ;;  %1321 = vmatpush3.bf16.msra.mxu1 %v1320_v7 }
 0x2ba   :  { %v567_v10 = vadd.f32 %v1264_v12, %v439_v6  ;;  %v561_v15 = vpop.f32.mrb[15].mxu0  ;;  %1322 = vmatprep.subr.bf16.mxu1 %v1391_v44 }
 0x2bb   :  { %v1323_v16 = vpack.c.bf16 %v575_v9, %v574_v11  ;;  %v562_v18 = vadd.f32 %v561_v15, %v435_v13 }
 0x2bc   :  { %v577_v14 = vmax.f32 %v567_v10, 0.0 }
 0x2bd   :  { %v576_v19 = vmax.f32 %v562_v18, 0.0  ;;  %1324 = vmatpush3.bf16.msra.mxu1 %v1323_v16 }
 0x2be   :  { %1325 = vmatprep.subr.bf16.mxu1 %v1391_v44 }
 0x2bf   :  { %v1326_v4 = vpack.c.bf16 %v577_v14, %v576_v19 }
 0x2c1   :  { %1327 = vmatpush3.bf16.msra.mxu1 %v1326_v4 }
 0x2c4   :  { %1282 = vmatmul.mubr.msk.f32.vlgmr.msra.gmra.mrb[8].mxu1 %vm263_vm2, %v578_v20 }
 0x397   :  { %v654_v21 = vpop.f32.mrb[8].mxu1 }
 0x398   :  { %v1609_v22 = vadd.f32 %v654_v21, %v583_v17  ;;  %v1283_v23 = vpop.f32.mrb[9].mxu1 }
 0x39a   :  { %v661_v24 = vand.u32 2139095040, %v1609_v22  ;;  %1085 = vst [vmem:[#allocation2] sm:$0x7] %v1609_v22  ;;  %v658_v25 = vand.u32 2147483647, %v1609_v22  ;;  %v866_v26 = vrot.slane %v1609_v22, 1 }
 0x39b   :  { %vm660_vm15 = vcmp.lt.s32.totalorder %v1609_v22, 0 }
 0x39c   :  { %v662_v27 = vshrl.u32 %v661_v24, 23  ;;  %v665_v28 = vand.u32 8388607, %v658_v25  ;;  %v1618_v29 = vadd.f32 %v866_v26, %v1609_v22  ;;  %vm1659_vm0 = vcmp.le.f32.partialorder %v658_v25, 0.7853982 }
 0x39e   :  { %v1129_v30 = vadd.s32 4294967169, %v662_v27  ;;  %v872_v31 = vand.u32 2139095040, %v1618_v29  ;;  %v666_v33 = vor.u32 8388608, %v665_v28  ;;  %v869_v35 = vand.u32 2147483647, %v1618_v29 }
 0x3a0   :  { %v668_v32 = vadd.s32 1, %v1129_v30  ;;  %v873_v34 = vshrl.u32 %v872_v31, 23  ;;  %v1622_v40 = vshll.u32 %v666_v33, 8  ;;  %v876_v44 = vand.u32 8388607, %v869_v35 }
 0x3a2   :  { %vm669_vm4 = vcmp.gt.s32.totalorder %v668_v32, 0  ;;  %v1137_v37 = vadd.s32 4294967169, %v873_v34  ;;  %v877_v12 = vor.u32 8388608, %v876_v44 }
 0x3a3   :  { %v670_v36 = vsel %vm669_vm4, %v668_v32, 0  ;;  %vm871_vm4 = vcmp.lt.s32.totalorder %v1618_v29, 0 }
 0x3a4   :  { %v671_v38 = vshrl.u32 %v670_v36, 5  ;;  %v672_v39 = vand.u32 31, %v670_v36  ;;  %v879_v45 = vadd.s32 1, %v1137_v37  ;;  %v917_v24 = vshll.u32 %v877_v12, 8 }
 0x3a6   :  { %v673_v41 = vsub.s32 32, %v672_v39  ;;  %v675_v43 = vshll.u32 %v1394_v42, %v672_v39  ;;  %v678_v47 = vshll.u32 %v1395_v46, %v672_v39  ;;  %v681_v49 = vshll.u32 %v1396_v48, %v672_v39 }
 0x3a7   :  { %v684_v51 = vshll.u32 %v1397_v50, %v672_v39  ;;  %v687_v53 = vshll.u32 %v1398_v52, %v672_v39  ;;  %vm690_vm5 = vcmp.lt.s32.totalorder %v671_v38, 1  ;;  %vm692_vm6 = vcmp.lt.s32.totalorder %v671_v38, 3 }
 0x3a8   :  { %v676_v54 = vshrl.u32 %v1395_v46, %v673_v41  ;;  %v679_v55 = vshrl.u32 %v1396_v48, %v673_v41  ;;  %v682_v56 = vshrl.u32 %v1397_v50, %v673_v41  ;;  %v674_v57 = vshrl.u32 %v1394_v42, %v673_v41 }
 0x3a9   :  { %v685_v58 = vshrl.u32 %v1398_v52, %v673_v41  ;;  %v688_v60 = vshrl.u32 %v1399_v59, %v673_v41  ;;  %vm880_vm7 = vcmp.gt.s32.totalorder %v879_v45, 0  ;;  %vm693_vm8 = vcmp.lt.s32.totalorder %v671_v38, 4 }
 0x3aa   :  { %v677_v61 = vor.u32 %v676_v54, %v675_v43  ;;  %v680_v62 = vor.u32 %v679_v55, %v678_v47  ;;  %v683_v63 = vor.u32 %v682_v56, %v681_v49  ;;  %v881_v2 = vsel %vm880_vm7, %v879_v45, 0 }
 0x3ab   :  { %v686_v0 = vor.u32 %v685_v58, %v684_v51  ;;  %v689_v1 = vor.u32 %v688_v60, %v687_v53  ;;  %vm691_vm9 = vcmp.lt.s32.totalorder %v671_v38, 2  ;;  %v883_v15 = vand.u32 31, %v881_v2 }
 0x3ac   :  { %v694_v3 = vsel %vm690_vm5, %v674_v57, %v677_v61  ;;  %v695_v5 = vsel %vm693_vm8, %v683_v63, 2102212464  ;;  %v698_v7 = vsel %vm690_vm5, %v677_v61, %v680_v62  ;;  %v702_v8 = vsel %vm690_vm5, %v680_v62, %v683_v63 }
 0x3ad   :  { %v696_v9 = vsel %vm692_vm6, %v680_v62, %v695_v5  ;;  %v699_v6 = vsel %vm693_vm8, %v686_v0, 920167782  ;;  %v703_v11 = vsel %vm693_vm8, %v689_v1, 1326507024  ;;  %v882_v21 = vshrl.u32 %v881_v2, 5 }
 0x3ae   :  { %v700_v13 = vsel %vm692_vm6, %v683_v63, %v699_v6  ;;  %v704_v10 = vsel %vm692_vm6, %v686_v0, %v703_v11  ;;  %v697_v16 = vsel %vm691_vm9, %v694_v3, %v696_v9  ;;  %v884_v23 = vsub.s32 32, %v883_v15 }
 0x3af   :  { %v701_v18 = vsel %vm691_vm9, %v698_v7, %v700_v13  ;;  %v705_v14 = vsel %vm691_vm9, %v702_v8, %v704_v10  ;;  %v713_v26 = vmul.u32 %v1622_v40, %v697_v16  ;;  %v886_v27 = vshll.u32 %v1394_v42, %v883_v15 }
 0x3b0   :  { %v1635_v19 = vmul.u32.u64.low %v1622_v40, %v705_v14  ;;  %v1636_v4 = vmul.u32.u64.high %v1622_v40, %v705_v14, %v1635_v19  ;;  %v1639_v20 = vmul.u32.u64.low %v1622_v40, %v701_v18  ;;  %v1640_v17 = vmul.u32.u64.high %v1622_v40, %v701_v18, %v1639_v20 }
 0x3b1   :  { %v889_v28 = vshll.u32 %v1395_v46, %v883_v15  ;;  %v892_v30 = vshll.u32 %v1396_v48, %v883_v15  ;;  %v887_v31 = vshrl.u32 %v1395_v46, %v884_v23  ;;  %v890_v32 = vshrl.u32 %v1396_v48, %v884_v23 }
 0x3b2   :  { %v893_v33 = vshrl.u32 %v1397_v50, %v884_v23  ;;  %v895_v34 = vshll.u32 %v1397_v50, %v883_v15  ;;  %vm715_vm10 = vc.u32 %v1636_v4, %v1639_v20  ;;  %v716_v36 = vadd.s32 1, %v1640_v17 }
 0x3b3   :  { %v896_v37 = vshrl.u32 %v1398_v52, %v884_v23  ;;  %v898_v38 = vshll.u32 %v1398_v52, %v883_v15  ;;  %v888_v39 = vor.u32 %v887_v31, %v886_v27  ;;  %v891_v41 = vor.u32 %v890_v32, %v889_v28 }
 0x3b4   :  { %v894_v43 = vor.u32 %v893_v33, %v892_v30  ;;  %v899_v44 = vshrl.u32 %v1399_v59, %v884_v23  ;;  %v717_v40 = vsel %vm715_vm10, %v716_v36, %v1640_v17  ;;  %vm901_vm11 = vcmp.lt.s32.totalorder %v882_v21, 1 }
 0x3b5   :  { %v897_v45 = vor.u32 %v896_v37, %v895_v34  ;;  %vm904_vm12 = vcmp.lt.s32.totalorder %v882_v21, 4  ;;  %v718_v46 = vadd.s32 %v717_v40, %v713_v26  ;;  %vm903_vm13 = vcmp.lt.s32.totalorder %v882_v21, 3 }
 0x3b6   :  { %v900_v47 = vor.u32 %v899_v44, %v898_v38  ;;  %v906_v48 = vsel %vm904_vm12, %v894_v43, 2102212464  ;;  %v885_v49 = vshrl.u32 %v1394_v42, %v884_v23  ;;  %v909_v50 = vsel %vm901_vm11, %v888_v39, %v891_v41 }
 0x3b7   :  { %v910_v51 = vsel %vm904_vm12, %v897_v45, 920167782  ;;  %v913_v53 = vsel %vm901_vm11, %v891_v41, %v894_v43  ;;  %v719_v54 = vadd.s32 536870912, %v718_v46  ;;  %vm902_vm14 = vcmp.lt.s32.totalorder %v882_v21, 2 }
 0x3b8   :  { %v911_v52 = vsel %vm903_vm13, %v894_v43, %v910_v51  ;;  %v914_v55 = vsel %vm904_vm12, %v900_v47, 1326507024  ;;  %v905_v56 = vsel %vm901_vm11, %v885_v49, %v888_v39  ;;  %v907_v57 = vsel %vm903_vm13, %v891_v41, %v906_v48 }
 0x3b9   :  { %v912_v58 = vsel %vm902_vm14, %v909_v50, %v911_v52  ;;  %v915_v59 = vsel %vm903_vm13, %v897_v45, %v914_v55  ;;  %v720_v60 = vshrl.u32 %v719_v54, 30  ;;  %v908_v3 = vsel %vm902_vm14, %v905_v56, %v907_v57 }
 0x3ba   :  { %v916_v61 = vsel %vm902_vm14, %v913_v53, %v915_v59  ;;  %v1650_v62 = vmul.u32.u64.low %v917_v24, %v912_v58  ;;  %v1651_v63 = vmul.u32.u64.high %v917_v24, %v912_v58, %v1650_v62  ;;  %v924_v11 = vmul.u32 %v917_v24, %v908_v3 }
 0x3bb   :  { %v1653_v0 = vmul.u32.u64.low %v917_v24, %v916_v61  ;;  %v1654_v1 = vmul.u32.u64.high %v917_v24, %v916_v61, %v1653_v0  ;;  %v721_v42 = vshll.u32 %v720_v60, 30  ;;  %v744_v2 = vsub.s32 4, %v720_v60 }
 0x3bc   :  { %v927_v9 = vadd.s32 1, %v1651_v63  ;;  %v714_v23 = vadd.s32 %v1639_v20, %v1636_v4  ;;  %vm870_vm5 = vcmp.le.f32.partialorder %v869_v35, 0.7853982  ;;  %vm750_vm12 = vweird.f32 %v1609_v22 }
 0x3bd   :  { %v722_v7 = vsub.s32 %v718_v46, %v721_v42  ;;  %v745_v8 = vsel %vm660_vm15, %v744_v2, %v720_v60  ;;  %vm926_vm1 = vc.u32 %v1654_v1, %v1650_v62  ;;  %v925_v40 = vadd.s32 %v1650_v62, %v1654_v1 }
 0x3be   :  { %v747_v6 = vsel %vm1659_vm0, 0, %v745_v8  ;;  %v928_v13 = vsel %vm926_vm1, %v927_v9, %v1651_v63 }
 0x3bf   :  { %v724_v12 = vsub.s32 0, %v722_v7  ;;  %v929_v10 = vadd.s32 %v928_v13, %v924_v11  ;;  %v854_v56 = vadd.s32 3, %v747_v6  ;;  %v751_v59 = vand.u32 3, %v747_v6 }
 0x3c1   :  { %v1130_v25 = vmin.u32 %v724_v12, %v722_v7  ;;  %v930_v15 = vadd.s32 536870912, %v929_v10  ;;  %v855_v61 = vand.u32 3, %v854_v56  ;;  %vm756_vm6 = vcmp.eq.s32.totalorder %v751_v59, 2 }
 0x3c2   :  { %vm753_vm8 = vcmp.eq.s32.totalorder %v751_v59, 0  ;;  %vm752_vm10 = vcmp.lt.s32.totalorder %v751_v59, 2 }
 0x3c3   :  { %v726_v16 = vclz %v1130_v25  ;;  %v931_v18 = vshrl.u32 %v930_v15, 30  ;;  %vm860_vm7 = vcmp.eq.s32.totalorder %v855_v61, 2  ;;  %vm857_vm9 = vcmp.eq.s32.totalorder %v855_v61, 0 }
 0x3c4   :  { %vm856_vm11 = vcmp.lt.s32.totalorder %v855_v61, 2 }
 0x3c5   :  { %v1131_v14 = vadd.s32 4294967294, %v726_v16  ;;  %v932_v19 = vshll.u32 %v931_v18, 30  ;;  %v955_v58 = vsub.s32 4, %v931_v18 }
 0x3c7   :  { %vm1132_vm2 = vcmp.lt.s32.totalorder %v1131_v14, 0  ;;  %v933_v21 = vsub.s32 %v929_v10, %v932_v19  ;;  %v956_v63 = vsel %vm871_vm4, %v955_v58, %v931_v18 }
 0x3c8   :  { %v729_v17 = vsel %vm1132_vm2, 0, %v1131_v14  ;;  %v958_v5 = vsel %vm870_vm5, 0, %v956_v63 }
 0x3c9   :  { %v730_v26 = vsub.s32 32, %v729_v17  ;;  %v734_v24 = vsub.s32 4294967266, %v729_v17  ;;  %v935_v27 = vsub.s32 0, %v933_v21  ;;  %v731_v28 = vshll.u32 %v722_v7, %v729_v17 }
 0x3ca   :  { %v1065_v12 = vadd.s32 3, %v958_v5  ;;  %v962_v25 = vand.u32 3, %v958_v5 }
 0x3cb   :  { %v732_v30 = vshrl.u32 %v714_v23, %v730_v26  ;;  %v735_v31 = vadd.s32 127, %v734_v24  ;;  %v1138_v32 = vmin.u32 %v935_v27, %v933_v21 }
 0x3cc   :  { %v1066_v15 = vand.u32 3, %v1065_v12  ;;  %vm967_vm13 = vcmp.eq.s32.totalorder %v962_v25, 2  ;;  %vm963_vm1 = vcmp.lt.s32.totalorder %v962_v25, 2 }
 0x3cd   :  { %v733_v33 = vor.u32 %v732_v30, %v731_v28  ;;  %v736_v34 = vshll.u32 %v735_v31, 23  ;;  %v937_v36 = vclz %v1138_v32 }
 0x3ce   :  { %vm1071_vm14 = vcmp.eq.s32.totalorder %v1066_v15, 2  ;;  %vm1067_vm2 = vcmp.lt.s32.totalorder %v1066_v15, 2 }
 0x3cf   :  { %v737_v37 = vor.u32 4788187, %v736_v34  ;;  %v1139_v38 = vadd.s32 4294967294, %v937_v36  ;;  %v740_v41 = vcvt.s32.f32 %v733_v33 }
 0x3d1   :  { %v738_v39 = vand.u32 2147483647, %v737_v37  ;;  %vm1140_vm3 = vcmp.lt.s32.totalorder %v1139_v38, 0 }
 0x3d2   :  { %v940_v44 = vsel %vm1140_vm3, 0, %v1139_v38  ;;  %vm961_vm3 = vweird.f32 %v1618_v29 }
 0x3d3   :  { %v741_v43 = vmul.f32 %v740_v41, %v738_v39  ;;  %v941_v4 = vsub.s32 32, %v940_v44  ;;  %v945_v20 = vsub.s32 4294967266, %v940_v44  ;;  %v942_v46 = vshll.u32 %v933_v21, %v940_v44 }
 0x3d5   :  { %v742_v45 = vxor.u32 2147483648, %v741_v43  ;;  %v943_v47 = vshrl.u32 %v925_v40, %v941_v4  ;;  %v946_v48 = vadd.s32 127, %v945_v20 }
 0x3d7   :  { %v743_v49 = vsel %vm660_vm15, %v742_v45, %v741_v43  ;;  %v944_v51 = vor.u32 %v943_v47, %v942_v46  ;;  %v947_v53 = vshll.u32 %v946_v48, 23  ;;  %vm964_vm15 = vcmp.eq.s32.totalorder %v962_v25, 0 }
 0x3d8   :  { %v746_v50 = vsel %vm1659_vm0, %v1609_v22, %v743_v49  ;;  %vm1068_vm0 = vcmp.eq.s32.totalorder %v1066_v15, 0 }
 0x3d9   :  { %1356 = vcosq.f32 %v746_v50  ;;  %v948_v54 = vor.u32 4788187, %v947_v53  ;;  %v951_v55 = vcvt.s32.f32 %v944_v51 }
 0x3da   :  { %1358 = vsinq.f32 %v746_v50 }
 0x3db   :  { %v949_v52 = vand.u32 2147483647, %v948_v54 }
 0x3dd   :  { %v952_v57 = vmul.f32 %v951_v55, %v949_v52 }
 0x3df   :  { %v953_v60 = vxor.u32 2147483648, %v952_v57 }
 0x3e1   :  { %v954_v62 = vsel %vm871_vm4, %v953_v60, %v952_v57 }
 0x3e2   :  { %v957_v1 = vsel %vm870_vm5, %v1618_v29, %v954_v62 }
 0x3e3   :  { %v1357_v0 = vpop.eup %1356  ;;  %1360 = vcosq.f32 %v957_v1 }
 0x3e4   :  { %v1359_v42 = vpop.eup %1358  ;;  %v757_v2 = vxor.u32 2147483648, %v1357_v0  ;;  %1362 = vsinq.f32 %v957_v1 }
 0x3e5   :  { %v754_v3 = vxor.u32 2147483648, %v1359_v42 }
 0x3e6   :  { %v758_v7 = vsel %vm756_vm6, %v757_v2, %v1359_v42  ;;  %v862_v8 = vsel %vm860_vm7, %v757_v2, %v1359_v42 }
 0x3e7   :  { %v755_v9 = vsel %vm753_vm8, %v1357_v0, %v754_v3  ;;  %v859_v35 = vsel %vm857_vm9, %v1357_v0, %v754_v3 }
 0x3e8   :  { %v759_v6 = vsel %vm752_vm10, %v755_v9, %v758_v7  ;;  %v863_v11 = vsel %vm856_vm11, %v859_v35, %v862_v8 }
 0x3e9   :  { %v760_v13 = vsel %vm750_vm12, nan, %v759_v6  ;;  %v864_v10 = vsel %vm750_vm12, nan, %v863_v11 }
 0x3ed   :  { %v1361_v16 = vpop.eup %1360 }
 0x3ee   :  { %v1363_v18 = vpop.eup %1362  ;;  %v968_v14 = vxor.u32 2147483648, %v1361_v16 }
 0x3ef   :  { %v965_v19 = vxor.u32 2147483648, %v1363_v18 }
 0x3f0   :  { %v969_v17 = vsel %vm967_vm13, %v968_v14, %v1363_v18  ;;  %v1073_v21 = vsel %vm1071_vm14, %v968_v14, %v1363_v18 }
 0x3f1   :  { %v966_v23 = vsel %vm964_vm15, %v1361_v16, %v965_v19  ;;  %v1070_v22 = vsel %vm1068_vm0, %v1361_v16, %v965_v19 }
 0x3f2   :  { %v970_v26 = vsel %vm963_vm1, %v966_v23, %v969_v17  ;;  %v1074_v24 = vsel %vm1067_vm2, %v1070_v22, %v1073_v21 }
 0x3f3   :  { %v971_v27 = vsel %vm961_vm3, nan, %v970_v26  ;;  %v1075_v28 = vsel %vm961_vm3, nan, %v1074_v24 }
 0x3f4   :  { %v1076_v30 = vmul.f32 0.8, %v971_v27  ;;  %v1083_v31 = vmul.f32 0.8, %v1075_v28 }
 0x3f6   :  { %v1077_v32 = vadd.f32 %v1076_v30, %v760_v13  ;;  %v1084_v33 = vadd.f32 %v1083_v31, %v864_v10 }
 0x3f8   :  { %v1079_v34 = vrot.slane %v1077_v32, 1  ;;  %1088 = vst [vmem:[#allocation2 + $0x4] sm:$0x2] %v1084_v33 }
 0x3fa   :  { %v1081_v36 = vmul.f32 %v1079_v34, %v760_v13  ;;  %v1082_v37 = vmul.f32 %v1079_v34, %v864_v10 }
 0x3fc   :  { %1086 = vst [vmem:[#allocation2 + $0x3] sm:$0x1] %v1081_v36  ;;  %1087 = vst [vmem:[#allocation2 + $0x4] sm:$0x1] %v1082_v37 }
 0x3fd   :  { %1375 = shalt.err (!%p1372_p4)
}
 0x3fe   :  { %s1376_s14 = scalar_lea.hbm %s1702_s6, 128 }
 0x3ff   :  { %p1377_p5 = scmp.ne.s32.totalorder %s1702_s6, %s1376_s14  ;;  %p1380_p6 = scmp.lt.u32.totalorder %s1376_s14, %s1702_s6 }
 0x401   :  { %p1382_p7 = pnand %p1380_p6, %p1377_p5 }
 0x403   :  { %1385 = shalt.err (!%p1382_p7)
}
 0x404   :  { %1098 = dma.vmem_to_hbm [thread:$0]  %s1096_s10, 128, %s1702_s6, [#allocation3]  }
 0x405   :  { %1386 = dma.done.wait [#allocation3], 128  }
 0x406   :  { %1387 = vsyncadd [#allocation3], 4294967168 }
 0x407   :  { %1102 = vsyncpa [#allocation3], 1 }

</bundles_post_ra>
